<compile_context>
chip_gen: v6e
topology: v6e:2x2x1
jax: 0.10.0
libtpu: 0.0.40
codegen_flags: <defaults>
</compile_context>

<pallas_src>
import functools
import math

import jax
import jax.numpy as jnp
from jax.experimental import pallas as pl
from jax.experimental.pallas import tpu as pltpu


def _base_norm_kernel(x_ref, mean_ref, var_ref, o_ref, *, eps, compute_dtype):
    # Stats are [1, TF] f32 and tiny relative to the [TB, TF] stream; fold the
    # sqrt/divide into one per-feature rsqrt so the hot path is sub + mul only.
    inv_std = jax.lax.rsqrt(var_ref[...] + eps)            # [1, TF] f32
    mean = mean_ref[...].astype(compute_dtype)              # [1, TF]
    inv_std = inv_std.astype(compute_dtype)
    x = x_ref[...].astype(compute_dtype)                    # [TB, TF]
    # (x - mean) * inv_std keeps the reference rounding behaviour, unlike the
    # x*inv_std - mean*inv_std refactor (which loses precision for large mean).
    o_ref[...] = ((x - mean) * inv_std).astype(o_ref.dtype)


def _device_kind():
    try:
        return jax.devices()[0].device_kind.lower()
    except Exception:
        return ""


def _default_target_tile_bytes():
    """Per-generation x-tile byte target (HBM streaming pipelining knee)."""
    kind = _device_kind()
    if "v5 lite" in kind or "v5e" in kind or "v5lite" in kind:
        return 3 * 2 ** 20          # smaller scoped-VMEM default on v5e
    if "v7" in kind:
        return 8 * 2 ** 20          # faster HBM -> fixed per-step cost bigger
    return 4 * 2 ** 20              # v6e and default


def _select_compute_dtype(x_dtype):
    x_dtype = jnp.dtype(x_dtype)
    if x_dtype == jnp.dtype(jnp.bfloat16):
        kind = _device_kind()
        # v5e has no bf16 VPU: keep the hot path in f32 there.
        if "v5 lite" in kind or "v5e" in kind or "v5lite" in kind:
            return jnp.float32
        return jnp.bfloat16
    return jnp.float32


def _lane_pack_factor(batch, num_features, max_factor=128):
    """Smallest k with (k*num_features) % 128 == 0 and batch % k == 0, else 1."""
    if num_features <= 0 or num_features % 128 == 0:
        return 1
    k = 128 // math.gcd(num_features, 128)
    if k <= 1 or k > max_factor or batch % k != 0:
        return 1
    return k


def _choose_tiles(rows, cols, itemsize, sublane, target_bytes):
    """Pick (tb, tf) block shape for a [rows, cols] array, layout-legal."""
    # Feature (lane) tile: only split when even a minimum-height block of the
    # full feature width overshoots the budget (very wide F).
    if cols > 128 and cols * sublane * itemsize > target_bytes:
        tf = (target_bytes // (sublane * itemsize)) // 128 * 128
        tf = max(128, tf)            # multiple of 128 (< cols here) => legal
    else:
        tf = cols                    # full feature dim => always legal

    # Batch (sublane) tile: as big as fits the budget, sublane aligned.
    tb = (target_bytes // max(1, tf * itemsize)) // sublane * sublane
    tb = max(sublane, tb)
    if tb >= rows:
        tb = rows
        # Keep >= 2 grid steps along the (parallel) batch axis when rows allow,
        # so v7x's two TensorCores both get work (no-op cost on v5e/v6e).
        if rows >= 2 * sublane:
            half = -(-rows // 2)                     # ceil(rows / 2)
            tb = -(-half // sublane) * sublane       # round up to sublane mult
    return tb, tf


def base_norm_forward(x, running_mean, running_var, eps=1e-5,
                      target_tile_bytes=None):
    """Applies y = (x - running_mean) / sqrt(running_var + eps).

    Args:
      x:                 [..., num_features]
      running_mean:      [num_features]
      running_var:       [num_features]
      target_tile_bytes: optional override of the per-tile byte budget
                         (useful to force a multi-tile grid at small sizes).
    Returns:
      Same shape / dtype as x.
    """
    orig_shape = x.shape
    F = orig_shape[-1]
    x2d = x.reshape(-1, F)
    B = x2d.shape[0]

    mean_f32 = running_mean.reshape(F).astype(jnp.float32)
    var_f32 = running_var.reshape(F).astype(jnp.float32)

    # Lane-dense repack: fold k batch rows into the lane axis so the last dim
    # is a multiple of 128 (no masked vst.msk stores, no 75% lane padding).
    k = _lane_pack_factor(B, F)
    rows, cols = B // k, k * F
    if k > 1:
        x2d = x2d.reshape(rows, cols)
        mean_f32 = jnp.tile(mean_f32, k)
        var_f32 = jnp.tile(var_f32, k)
    mean2d = mean_f32.reshape(1, cols)
    var2d = var_f32.reshape(1, cols)

    itemsize = jnp.dtype(x.dtype).itemsize
    sublane = max(8, 32 // max(1, itemsize))       # 8 f32 / 16 bf16 / 32 int8
    if target_tile_bytes is None:
        target_tile_bytes = _default_target_tile_bytes()
    tb, tf = _choose_tiles(rows, cols, itemsize, sublane, target_tile_bytes)

    grid = (pl.cdiv(rows, tb), pl.cdiv(cols, tf))

    compute_dtype = _select_compute_dtype(x.dtype)
    kernel = functools.partial(_base_norm_kernel, eps=float(eps),
                               compute_dtype=compute_dtype)

    # Double-buffered x-in + y-out tiles plus f32 stats, with slack; never
    # below 32 MiB (safe on every generation: v5e/v6e physical 128 MiB,
    # v7x physical 64 MiB) and capped at 48 MiB for v7x headroom.
    req_vmem = 2 * (2 * tb * tf * itemsize + 2 * tf * 4) + (2 << 20)
    vmem_limit = int(min(48 * 2 ** 20, max(32 * 2 ** 20, req_vmem)))

    y = pl.pallas_call(
        kernel,
        out_shape=jax.ShapeDtypeStruct((rows, cols), x.dtype),
        grid=grid,
        in_specs=[
            pl.BlockSpec((tb, tf), lambda i, j: (i, j)),   # x: batch x feature
            pl.BlockSpec((1, tf), lambda i, j: (0, j)),    # mean: per-feature
            pl.BlockSpec((1, tf), lambda i, j: (0, j)),    # var:  per-feature
        ],
        out_specs=pl.BlockSpec((tb, tf), lambda i, j: (i, j)),
        compiler_params=pltpu.CompilerParams(
            dimension_semantics=("parallel", "parallel"),
            vmem_limit_bytes=vmem_limit,
        ),
    )(x2d, mean2d, var2d)

    return y.reshape(orig_shape)


if __name__ == "__main__":
    eps = 1e-5
    key = jax.random.PRNGKey(0)
    keys = jax.random.split(key, 8)

    def ref(xf, m, v):
        return (xf - m[None, :]) / jnp.sqrt(v[None, :] + eps)

    # --- Test 1: module-consistent small shape (batch=8, num_features=32). ---
    # Exercises the lane-dense repack (32 -> 128 lanes).
    B, F = 8, 32
    x = jax.random.normal(keys[0], (B, F), dtype=jnp.float32)
    m = 0.1 * jax.random.normal(keys[1], (F,), dtype=jnp.float32)
    v = jnp.abs(jax.random.normal(keys[2], (F,), dtype=jnp.float32)) + 0.5
    y = base_norm_forward(x, m, v, eps)
    jax.block_until_ready(y)
    assert jnp.allclose(y, ref(x, m, v), atol=1e-5, rtol=1e-5), "mismatch (8x32)"

    # --- Test 2: multi-tile batch grid with lane packing (tiny tile budget). ---
    B2 = 64
    x2 = jax.random.normal(keys[3], (B2, F), dtype=jnp.float32)
    y2 = base_norm_forward(x2, m, v, eps, target_tile_bytes=4096)
    jax.block_until_ready(y2)
    assert jnp.allclose(y2, ref(x2, m, v), atol=1e-5, rtol=1e-5), "mismatch (64x32)"

    # --- Test 3: non-packable F (fallback full-width blocks) + 2-way batch split. ---
    B3, F3 = 24, 40
    x3 = jax.random.normal(keys[4], (B3, F3), dtype=jnp.float32)
    m3 = 0.1 * jax.random.normal(keys[5], (F3,), dtype=jnp.float32)
    v3 = jnp.abs(jax.random.normal(keys[6], (F3,), dtype=jnp.float32)) + 0.5
    y3 = base_norm_forward(x3, m3, v3, eps)
    jax.block_until_ready(y3)
    assert jnp.allclose(y3, ref(x3, m3, v3), atol=1e-5, rtol=1e-5), "mismatch (24x40)"

    # --- Test 4: wide-feature path -> feature-axis grid (stats indexed by j). ---
    B4, F4 = 16, 256
    x4 = jax.random.normal(keys[7], (B4, F4), dtype=jnp.float32)
    m4 = 0.1 * jax.random.normal(keys[1], (F4,), dtype=jnp.float32)
    v4 = jnp.abs(jax.random.normal(keys[2], (F4,), dtype=jnp.float32)) + 0.5
    y4 = base_norm_forward(x4, m4, v4, eps, target_tile_bytes=4096)
    jax.block_until_ready(y4)
    assert jnp.allclose(y4, ref(x4, m4, v4), atol=1e-5, rtol=1e-5), "mismatch (16x256)"

    # --- Test 5: bf16 input (f32 stats, bf16 hot path where supported). ---
    xb = x.astype(jnp.bfloat16)
    yb = base_norm_forward(xb, m, v, eps)
    jax.block_until_ready(yb)
    yb_ref = ref(xb.astype(jnp.float32), m, v)
    assert jnp.allclose(yb.astype(jnp.float32), yb_ref, atol=1e-1, rtol=5e-2), \
        "mismatch (bf16)"

    print("KERNEL_OK")
</pallas_src>

<mosaic_0001>
module attributes {stable_mosaic.version = 11 : i64} {
  func.func @_base_norm_kernel(%arg0: i32, %arg1: i32, %arg2: memref<2x128xf32, #tpu.memory_space<vmem>>, %arg3: memref<1x128xf32, #tpu.memory_space<vmem>>, %arg4: memref<1x128xf32, #tpu.memory_space<vmem>>, %arg5: memref<2x128xf32, #tpu.memory_space<vmem>>) attributes {dimension_semantics = [#tpu.dimension_semantics<parallel>, #tpu.dimension_semantics<parallel>], iteration_bounds = array<i64: 1, 1>, scalar_prefetch = 0 : i64, scratch_operands = 0 : i64, tpu.core_type = #tpu.core_type<tc>, window_params = [{transform_indices = @transform_0, window_bounds = array<i64: 2, 128>}, {transform_indices = @transform_1, window_bounds = array<i64: 1, 128>}, {transform_indices = @transform_2, window_bounds = array<i64: 1, 128>}, {transform_indices = @transform_3, window_bounds = array<i64: 2, 128>}]} {
    %c0 = arith.constant 0 : index
    %c0_0 = arith.constant 0 : index
    %0 = vector.load %arg4[%c0, %c0_0] : memref<1x128xf32, #tpu.memory_space<vmem>>, vector<1x128xf32>
    %cst = arith.constant 9.99999974E-6 : f32
    %1 = vector.broadcast %cst : f32 to vector<1x128xf32>
    %2 = arith.addf %0, %1 : vector<1x128xf32>
    %3 = math.rsqrt %2 : vector<1x128xf32>
    %c0_1 = arith.constant 0 : index
    %c0_2 = arith.constant 0 : index
    %4 = vector.load %arg3[%c0_1, %c0_2] : memref<1x128xf32, #tpu.memory_space<vmem>>, vector<1x128xf32>
    %c0_3 = arith.constant 0 : index
    %c0_4 = arith.constant 0 : index
    %5 = vector.load %arg2[%c0_3, %c0_4] : memref<2x128xf32, #tpu.memory_space<vmem>>, vector<2x128xf32>
    %6 = vector.broadcast %4 : vector<1x128xf32> to vector<2x128xf32>
    %7 = arith.subf %5, %6 : vector<2x128xf32>
    %8 = vector.broadcast %3 : vector<1x128xf32> to vector<2x128xf32>
    %9 = arith.mulf %7, %8 : vector<2x128xf32>
    %c0_5 = arith.constant 0 : index
    %c0_6 = arith.constant 0 : index
    %10 = vector.load %arg5[%c0_5, %c0_6] : memref<2x128xf32, #tpu.memory_space<vmem>>, vector<2x128xf32>
    tpu.vector_store %arg5[%c0_5, %c0_6], %9 {strides = array<i32>} : memref<2x128xf32, #tpu.memory_space<vmem>>, vector<2x128xf32>,
    return
  }
  func.func @transform_0(%arg0: i32, %arg1: i32) -> (i32, i32) {
    %c0_i32 = arith.constant 0 : i32
    return %arg0, %arg1 : i32, i32
  }
  func.func @transform_1(%arg0: i32, %arg1: i32) -> (i32, i32) {
    %c0_i32 = arith.constant 0 : i32
    %c0_i32_0 = arith.constant 0 : i32
    return %c0_i32, %arg1 : i32, i32
  }
  func.func @transform_2(%arg0: i32, %arg1: i32) -> (i32, i32) {
    %c0_i32 = arith.constant 0 : i32
    %c0_i32_0 = arith.constant 0 : i32
    return %c0_i32, %arg1 : i32, i32
  }
  func.func @transform_3(%arg0: i32, %arg1: i32) -> (i32, i32) {
    %c0_i32 = arith.constant 0 : i32
    return %arg0, %arg1 : i32, i32
  }
}

</mosaic_0001>

<bundles_post_ra>
// kernel: tpu_custom_call.1
= control target key start
LH: loop header
LB: loop body
LE: loop exit
PB: predicated region body
PF: predicated region fallthrough
CT: control target
= control target key end

     0   :  { %8 = vsyncpa [#allocation3], 0  ;;  %s145_s0 = inlined_call_operand.hbm [shape: f32[2,128], index: 0, kind: input, shape index: {}]   ;;  %s146_s1 = inlined_call_operand.vmem [shape: f32[1,128], index: 1, kind: input, shape index: {}]   ;;  %s147_s2 = inlined_call_operand.vmem [shape: f32[1,128], index: 2, kind: input, shape index: {}]   ;;  %s148_s3 = inlined_call_operand.hbm [shape: f32[2,128], index: 3, kind: output, shape index: {}]  }
   0x1   :  { %9 = vsyncpa [#allocation4], 0  ;;  %s111_s12 = smov [#allocation2]  }
   0x2   :  { %s16_s13 = sshll.u32 %s111_s12, 4  ;;  %s17_s13 = int_to_ptr.vmem [resolvable:$true] %s16_s13 }
   0x3   :  { %s75_s14 = scalar_lea.vmem %s17_s13, 32  ;;  %p80_p1 = scmp.lt.s32.totalorder %s17_s13, %s17_s13 }
   0x4   :  { %p76_p0 = scmp.ne.s32.totalorder %s17_s13, %s75_s14  ;;  %p81_p2 = scmp.lt.s32.totalorder %s75_s14, %s75_s14 }
   0x6   :  { %p82_p3 = por %p81_p2, %p80_p1 }
   0x8   :  { %p83_p4 = pnand %p82_p3, %p76_p0 }
   0xa   :  { %86 = shalt.err (!%p83_p4)
}
   0xb   :  { %19 = dma.hbm_to_vmem [thread:$0]  %s145_s0, 32, %s17_s13, [#allocation3]  }
   0xc   :  { %107 = dma.done.wait [#allocation3], 32  }
   0xd   :  { %108 = vsyncadd [#allocation3], 4294967264  ;;  %v27_v0 = vld [vmem:[%s147_s2] sm:$0x1]  ;;  %v40_v2 = vlaneseq  ;;  %s112_s21 = smov [#allocation5]  }
   0xe   :  { %v28_v1 = vadd.f32 1e-05, %v27_v0  ;;  %v62_v4 = vld [vmem:[%s146_s1] ss:$0 sm:$0xff]  ;;  %s53_s0 = sshll.u32 %s112_s21, 4  ;;  %s54_s0 = int_to_ptr.vmem [resolvable:$true] %s53_s0 }
   0xf   :  { %v41_v3 = vshrl.u32 %v40_v2, 7  ;;  %v31_v5 = vld [vmem:[#allocation2] sm:$0x3]  ;;  %s87_s22 = scalar_lea.vmem %s54_s0, 32  ;;  %p92_p6 = scmp.lt.s32.totalorder %s54_s0, %s54_s0 }
  0x10   :  { %65 = vrsqrt.f32 %v28_v1  ;;  %v38_v7 = vsub.f32 %v31_v5, %v62_v4  ;;  %p88_p5 = scmp.ne.s32.totalorder %s54_s0, %s87_s22  ;;  %p93_p7 = scmp.lt.s32.totalorder %s87_s22, %s87_s22 }
  0x11   :  { %v42_v6 = vsub.s32 0, %v41_v3 }
  0x12   :  { %p94_p8 = por %p93_p7, %p92_p6 }
  0x14   :  { %p95_p9 = pnand %p94_p8, %p88_p5 }
  0x1d   :  { %v66_v8 = vpop.eup %65 }
  0x1e   :  { %v43_v9 = vrot.slane %v66_v8, %v42_v6 }
  0x20   :  { %v45_v10 = vmul.f32 %v43_v9, %v38_v7 }
  0x22   :  { %46 = vst [vmem:[#allocation5] sm:$0x3] %v45_v10 }
  0x23   :  { %98 = shalt.err (!%p95_p9)
}
  0x24   :  { %56 = dma.vmem_to_hbm [thread:$0]  %s54_s0, 32, %s148_s3, [#allocation4]  }
  0x25   :  { %109 = dma.done.wait [#allocation4], 32  }
  0x26   :  { %110 = vsyncadd [#allocation4], 4294967264 }
  0x27   :  { %60 = vsyncpa [#allocation3], 1 }
  0x28   :  { %61 = vsyncpa [#allocation4], 1 }

</bundles_post_ra>
